<compile_context>
chip_gen: v5e
topology: v5e:2x2
jax: 0.10.0
libtpu: 0.0.40
codegen_flags: <defaults>
</compile_context>

<pallas_src>
import jax
import jax.numpy as jnp
from jax.experimental import pallas as pl
from jax.experimental.pallas import tpu as pltpu


def mlp_kernel(x_ref,
               w1_ref, b1_ref,
               w2_ref, b2_ref,
               w3_ref, b3_ref,
               w4_ref, b4_ref,
               w5_ref, b5_ref,
               o_ref):
    """Activations are (features, TM); batch tile lives on the lane axis."""
    h = x_ref[...]                                                    # (32, TM) bf16

    h = jnp.dot(w1_ref[...], h, preferred_element_type=jnp.float32) + b1_ref[...]
    h = jnp.maximum(h, 0.0).astype(jnp.bfloat16)                      # (128, TM)

    h = jnp.dot(w2_ref[...], h, preferred_element_type=jnp.float32) + b2_ref[...]
    h = jnp.maximum(h, 0.0).astype(jnp.bfloat16)                      # (64, TM)

    h = jnp.dot(w3_ref[...], h, preferred_element_type=jnp.float32) + b3_ref[...]
    h = jnp.maximum(h, 0.0).astype(jnp.bfloat16)                      # (32, TM)

    h = jnp.dot(w4_ref[...], h, preferred_element_type=jnp.float32) + b4_ref[...]
    h = jnp.maximum(h, 0.0).astype(jnp.bfloat16)                      # (16, TM)

    z = jnp.dot(w5_ref[...], h, preferred_element_type=jnp.float32) + b5_ref[...]
    # sigmoid(z) = 1 / (1 + exp(-z)); exp + reciprocal both route to the EUP.
    o_ref[...] = pl.reciprocal(1.0 + jnp.exp(-z), approx=True).astype(o_ref.dtype)


def mlp_forward(x, params, *, tm=256):
    """x: (B, input_dim) f32. params: list of (W, b) with W shaped (in, out).

    Returns (B, 1) f32, matching the PyTorch module's eval-mode forward.
    """
    B, in_dim = x.shape
    n_tiles = pl.cdiv(B, tm)
    b_pad = n_tiles * tm

    # Feature-major activation slab, bf16 for the MXU, zero-padded batch.
    xt = jnp.pad(x.T.astype(jnp.bfloat16), ((0, 0), (0, b_pad - B)))

    flat = [xt]
    in_specs = [pl.BlockSpec((in_dim, tm), lambda i: (0, i))]
    for w, b in params:
        wt = w.T.astype(jnp.bfloat16)                 # (out, in)  bf16
        bt = b.reshape(-1, 1).astype(jnp.float32)     # (out, 1)   f32
        flat += [wt, bt]
        # Constant index_map -> weights/biases stay VMEM-resident across steps.
        in_specs += [
            pl.BlockSpec(wt.shape, lambda i: (0, 0)),
            pl.BlockSpec(bt.shape, lambda i: (0, 0)),
        ]

    flops = 2 * b_pad * sum(int(w.shape[0]) * int(w.shape[1]) for w, _ in params)
    bytes_accessed = (
        xt.size * 2
        + sum(w.size * 2 + b.size * 4 for w, b in params)
        + b_pad * 4
    )

    out = pl.pallas_call(
        mlp_kernel,
        out_shape=jax.ShapeDtypeStruct((1, b_pad), jnp.float32),
        grid=(n_tiles,),
        in_specs=in_specs,
        out_specs=pl.BlockSpec((1, tm), lambda i: (0, i)),   # lane-dense store
        compiler_params=pltpu.CompilerParams(
            dimension_semantics=("parallel",),
        ),
        cost_estimate=pl.CostEstimate(
            flops=flops,
            transcendentals=2 * b_pad,          # exp + reciprocal per output
            bytes_accessed=int(bytes_accessed),
        ),
    )(*flat)

    return out[0, :B].reshape(B, 1)


def init_linear(key, in_dim, out_dim):
    # Deterministic init mimicking nn.Linear's uniform(-1/sqrt(in), 1/sqrt(in))
    kw, kb = jax.random.split(key)
    bound = 1.0 / jnp.sqrt(in_dim)
    w = jax.random.uniform(kw, (in_dim, out_dim), jnp.float32, -bound, bound)
    b = jax.random.uniform(kb, (out_dim,), jnp.float32, -bound, bound)
    return w, b


if __name__ == "__main__":
    input_dim = 32
    batch = 8

    key = jax.random.PRNGKey(0)
    keys = jax.random.split(key, 6)

    dims = [input_dim, 128, 64, 32, 16, 1]
    params = [init_linear(keys[i], dims[i], dims[i + 1]) for i in range(5)]

    x = jax.random.normal(keys[5], (batch, input_dim), jnp.float32)

    out = jax.block_until_ready(mlp_forward(x, params))

    # Pure-JAX f32 reference (dropout = identity in eval mode).
    ref = x
    for i, (w, b) in enumerate(params):
        ref = ref @ w + b
        ref = jnp.maximum(ref, 0.0) if i < 4 else jax.nn.sigmoid(ref)

    assert out.shape == (batch, 1)
    max_diff = float(jnp.max(jnp.abs(out - ref)))
    assert jnp.allclose(out, ref, atol=2e-2), f"mismatch vs reference: {max_diff}"

    print("KERNEL_OK")
</pallas_src>

<mosaic_0001>
module attributes {stable_mosaic.version = 11 : i64} {
  func.func @mlp_kernel(%arg0: i32, %arg1: memref<32x256xbf16, #tpu.memory_space<vmem>>, %arg2: memref<128x32xbf16, #tpu.memory_space<vmem>>, %arg3: memref<128x1xf32, #tpu.memory_space<vmem>>, %arg4: memref<64x128xbf16, #tpu.memory_space<vmem>>, %arg5: memref<64x1xf32, #tpu.memory_space<vmem>>, %arg6: memref<32x64xbf16, #tpu.memory_space<vmem>>, %arg7: memref<32x1xf32, #tpu.memory_space<vmem>>, %arg8: memref<16x32xbf16, #tpu.memory_space<vmem>>, %arg9: memref<16x1xf32, #tpu.memory_space<vmem>>, %arg10: memref<1x16xbf16, #tpu.memory_space<vmem>>, %arg11: memref<1x1xf32, #tpu.memory_space<vmem>>, %arg12: memref<1x256xf32, #tpu.memory_space<vmem>>) attributes {dimension_semantics = [#tpu.dimension_semantics<parallel>], iteration_bounds = array<i64: 1>, scalar_prefetch = 0 : i64, scratch_operands = 0 : i64, tpu.core_type = #tpu.core_type<tc>, window_params = [{transform_indices = @transform_0, window_bounds = array<i64: 32, 256>}, {pipeline_mode = #tpu.pipeline_mode<synchronous>, transform_indices = @transform_1, window_bounds = array<i64: 128, 32>}, {pipeline_mode = #tpu.pipeline_mode<synchronous>, transform_indices = @transform_2, window_bounds = array<i64: 128, 1>}, {pipeline_mode = #tpu.pipeline_mode<synchronous>, transform_indices = @transform_3, window_bounds = array<i64: 64, 128>}, {pipeline_mode = #tpu.pipeline_mode<synchronous>, transform_indices = @transform_4, window_bounds = array<i64: 64, 1>}, {pipeline_mode = #tpu.pipeline_mode<synchronous>, transform_indices = @transform_5, window_bounds = array<i64: 32, 64>}, {pipeline_mode = #tpu.pipeline_mode<synchronous>, transform_indices = @transform_6, window_bounds = array<i64: 32, 1>}, {pipeline_mode = #tpu.pipeline_mode<synchronous>, transform_indices = @transform_7, window_bounds = array<i64: 16, 32>}, {pipeline_mode = #tpu.pipeline_mode<synchronous>, transform_indices = @transform_8, window_bounds = array<i64: 16, 1>}, {pipeline_mode = #tpu.pipeline_mode<synchronous>, transform_indices = @transform_9, window_bounds = array<i64: 1, 16>}, {pipeline_mode = #tpu.pipeline_mode<synchronous>, transform_indices = @transform_10, window_bounds = array<i64: 1, 1>}, {transform_indices = @transform_11, window_bounds = array<i64: 1, 256>}]} {
    %c0 = arith.constant 0 : index
    %c0_0 = arith.constant 0 : index
    %0 = vector.load %arg1[%c0, %c0_0] : memref<32x256xbf16, #tpu.memory_space<vmem>>, vector<32x256xbf16>
    %c0_1 = arith.constant 0 : index
    %c0_2 = arith.constant 0 : index
    %1 = vector.load %arg2[%c0_1, %c0_2] : memref<128x32xbf16, #tpu.memory_space<vmem>>, vector<128x32xbf16>
    %cst = arith.constant dense<0.000000e+00> : vector<128x256xf32>
    %2 = tpu.matmul %1, %0, %cst {dimension_numbers = #tpu.dot_dimension_numbers<[1], [0], [0], [1], [0, 0, 1, 1], [], []>} : vector<128x32xbf16>, vector<32x256xbf16>, vector<128x256xf32> -> vector<128x256xf32>
    %c0_3 = arith.constant 0 : index
    %c0_4 = arith.constant 0 : index
    %3 = vector.load %arg3[%c0_3, %c0_4] : memref<128x1xf32, #tpu.memory_space<vmem>>, vector<128x1xf32>
    %4 = vector.broadcast %3 : vector<128x1xf32> to vector<128x256xf32>
    %5 = arith.addf %2, %4 : vector<128x256xf32>
    %cst_5 = arith.constant 0.000000e+00 : f32
    %6 = vector.broadcast %cst_5 : f32 to vector<128x256xf32>
    %7 = arith.maximumf %5, %6 : vector<128x256xf32>
    %8 = arith.truncf %7 : vector<128x256xf32> to vector<128x256xbf16>
    %c0_6 = arith.constant 0 : index
    %c0_7 = arith.constant 0 : index
    %9 = vector.load %arg4[%c0_6, %c0_7] : memref<64x128xbf16, #tpu.memory_space<vmem>>, vector<64x128xbf16>
    %cst_8 = arith.constant dense<0.000000e+00> : vector<64x256xf32>
    %10 = tpu.matmul %9, %8, %cst_8 {dimension_numbers = #tpu.dot_dimension_numbers<[1], [0], [0], [1], [0, 0, 1, 1], [], []>} : vector<64x128xbf16>, vector<128x256xbf16>, vector<64x256xf32> -> vector<64x256xf32>
    %c0_9 = arith.constant 0 : index
    %c0_10 = arith.constant 0 : index
    %11 = vector.load %arg5[%c0_9, %c0_10] : memref<64x1xf32, #tpu.memory_space<vmem>>, vector<64x1xf32>
    %12 = vector.broadcast %11 : vector<64x1xf32> to vector<64x256xf32>
    %13 = arith.addf %10, %12 : vector<64x256xf32>
    %cst_11 = arith.constant 0.000000e+00 : f32
    %14 = vector.broadcast %cst_11 : f32 to vector<64x256xf32>
    %15 = arith.maximumf %13, %14 : vector<64x256xf32>
    %16 = arith.truncf %15 : vector<64x256xf32> to vector<64x256xbf16>
    %c0_12 = arith.constant 0 : index
    %c0_13 = arith.constant 0 : index
    %17 = vector.load %arg6[%c0_12, %c0_13] : memref<32x64xbf16, #tpu.memory_space<vmem>>, vector<32x64xbf16>
    %cst_14 = arith.constant dense<0.000000e+00> : vector<32x256xf32>
    %18 = tpu.matmul %17, %16, %cst_14 {dimension_numbers = #tpu.dot_dimension_numbers<[1], [0], [0], [1], [0, 0, 1, 1], [], []>} : vector<32x64xbf16>, vector<64x256xbf16>, vector<32x256xf32> -> vector<32x256xf32>
    %c0_15 = arith.constant 0 : index
    %c0_16 = arith.constant 0 : index
    %19 = vector.load %arg7[%c0_15, %c0_16] : memref<32x1xf32, #tpu.memory_space<vmem>>, vector<32x1xf32>
    %20 = vector.broadcast %19 : vector<32x1xf32> to vector<32x256xf32>
    %21 = arith.addf %18, %20 : vector<32x256xf32>
    %cst_17 = arith.constant 0.000000e+00 : f32
    %22 = vector.broadcast %cst_17 : f32 to vector<32x256xf32>
    %23 = arith.maximumf %21, %22 : vector<32x256xf32>
    %24 = arith.truncf %23 : vector<32x256xf32> to vector<32x256xbf16>
    %c0_18 = arith.constant 0 : index
    %c0_19 = arith.constant 0 : index
    %25 = vector.load %arg8[%c0_18, %c0_19] : memref<16x32xbf16, #tpu.memory_space<vmem>>, vector<16x32xbf16>
    %cst_20 = arith.constant dense<0.000000e+00> : vector<16x256xf32>
    %26 = tpu.matmul %25, %24, %cst_20 {dimension_numbers = #tpu.dot_dimension_numbers<[1], [0], [0], [1], [0, 0, 1, 1], [], []>} : vector<16x32xbf16>, vector<32x256xbf16>, vector<16x256xf32> -> vector<16x256xf32>
    %c0_21 = arith.constant 0 : index
    %c0_22 = arith.constant 0 : index
    %27 = vector.load %arg9[%c0_21, %c0_22] : memref<16x1xf32, #tpu.memory_space<vmem>>, vector<16x1xf32>
    %28 = vector.broadcast %27 : vector<16x1xf32> to vector<16x256xf32>
    %29 = arith.addf %26, %28 : vector<16x256xf32>
    %cst_23 = arith.constant 0.000000e+00 : f32
    %30 = vector.broadcast %cst_23 : f32 to vector<16x256xf32>
    %31 = arith.maximumf %29, %30 : vector<16x256xf32>
    %32 = arith.truncf %31 : vector<16x256xf32> to vector<16x256xbf16>
    %c0_24 = arith.constant 0 : index
    %c0_25 = arith.constant 0 : index
    %33 = vector.load %arg10[%c0_24, %c0_25] : memref<1x16xbf16, #tpu.memory_space<vmem>>, vector<1x16xbf16>
    %cst_26 = arith.constant dense<0.000000e+00> : vector<1x256xf32>
    %34 = tpu.matmul %33, %32, %cst_26 {dimension_numbers = #tpu.dot_dimension_numbers<[1], [0], [0], [1], [0, 0, 1, 1], [], []>} : vector<1x16xbf16>, vector<16x256xbf16>, vector<1x256xf32> -> vector<1x256xf32>
    %c0_27 = arith.constant 0 : index
    %c0_28 = arith.constant 0 : index
    %35 = vector.load %arg11[%c0_27, %c0_28] : memref<1x1xf32, #tpu.memory_space<vmem>>, vector<1x1xf32>
    %36 = vector.broadcast %35 : vector<1x1xf32> to vector<1x256xf32>
    %37 = arith.addf %34, %36 : vector<1x256xf32>
    %cst_29 = arith.constant 0.000000e+00 : f32
    %38 = vector.broadcast %cst_29 : f32 to vector<1x256xf32>
    %39 = arith.subf %38, %37 : vector<1x256xf32>
    %40 = math.exp %39 : vector<1x256xf32>
    %cst_30 = arith.constant 1.000000e+00 : f32
    %41 = vector.broadcast %cst_30 : f32 to vector<1x256xf32>
    %42 = arith.addf %41, %40 : vector<1x256xf32>
    %43 = tpu.reciprocal %42 {approx = true} : vector<1x256xf32> -> vector<1x256xf32>
    %c0_31 = arith.constant 0 : index
    %c0_32 = arith.constant 0 : index
    %44 = vector.load %arg12[%c0_31, %c0_32] : memref<1x256xf32, #tpu.memory_space<vmem>>, vector<1x256xf32>
    tpu.vector_store %arg12[%c0_31, %c0_32], %43 {strides = array<i32>} : memref<1x256xf32, #tpu.memory_space<vmem>>, vector<1x256xf32>,
    return
  }
  func.func @transform_0(%arg0: i32) -> (i32, i32) {
    %c0_i32 = arith.constant 0 : i32
    %c0_i32_0 = arith.constant 0 : i32
    return %c0_i32, %arg0 : i32, i32
  }
  func.func @transform_1(%arg0: i32) -> (i32, i32) {
    %c0_i32 = arith.constant 0 : i32
    %c0_i32_0 = arith.constant 0 : i32
    %c0_i32_1 = arith.constant 0 : i32
    return %c0_i32, %c0_i32_0 : i32, i32
  }
  func.func @transform_2(%arg0: i32) -> (i32, i32) {
    %c0_i32 = arith.constant 0 : i32
    %c0_i32_0 = arith.constant 0 : i32
    %c0_i32_1 = arith.constant 0 : i32
    return %c0_i32, %c0_i32_0 : i32, i32
  }
  func.func @transform_3(%arg0: i32) -> (i32, i32) {
    %c0_i32 = arith.constant 0 : i32
    %c0_i32_0 = arith.constant 0 : i32
    %c0_i32_1 = arith.constant 0 : i32
    return %c0_i32, %c0_i32_0 : i32, i32
  }
  func.func @transform_4(%arg0: i32) -> (i32, i32) {
    %c0_i32 = arith.constant 0 : i32
    %c0_i32_0 = arith.constant 0 : i32
    %c0_i32_1 = arith.constant 0 : i32
    return %c0_i32, %c0_i32_0 : i32, i32
  }
  func.func @transform_5(%arg0: i32) -> (i32, i32) {
    %c0_i32 = arith.constant 0 : i32
    %c0_i32_0 = arith.constant 0 : i32
    %c0_i32_1 = arith.constant 0 : i32
    return %c0_i32, %c0_i32_0 : i32, i32
  }
  func.func @transform_6(%arg0: i32) -> (i32, i32) {
    %c0_i32 = arith.constant 0 : i32
    %c0_i32_0 = arith.constant 0 : i32
    %c0_i32_1 = arith.constant 0 : i32
    return %c0_i32, %c0_i32_0 : i32, i32
  }
  func.func @transform_7(%arg0: i32) -> (i32, i32) {
    %c0_i32 = arith.constant 0 : i32
    %c0_i32_0 = arith.constant 0 : i32
    %c0_i32_1 = arith.constant 0 : i32
    return %c0_i32, %c0_i32_0 : i32, i32
  }
  func.func @transform_8(%arg0: i32) -> (i32, i32) {
    %c0_i32 = arith.constant 0 : i32
    %c0_i32_0 = arith.constant 0 : i32
    %c0_i32_1 = arith.constant 0 : i32
    return %c0_i32, %c0_i32_0 : i32, i32
  }
  func.func @transform_9(%arg0: i32) -> (i32, i32) {
    %c0_i32 = arith.constant 0 : i32
    %c0_i32_0 = arith.constant 0 : i32
    %c0_i32_1 = arith.constant 0 : i32
    return %c0_i32, %c0_i32_0 : i32, i32
  }
  func.func @transform_10(%arg0: i32) -> (i32, i32) {
    %c0_i32 = arith.constant 0 : i32
    %c0_i32_0 = arith.constant 0 : i32
    %c0_i32_1 = arith.constant 0 : i32
    return %c0_i32, %c0_i32_0 : i32, i32
  }
  func.func @transform_11(%arg0: i32) -> (i32, i32) {
    %c0_i32 = arith.constant 0 : i32
    %c0_i32_0 = arith.constant 0 : i32
    return %c0_i32, %arg0 : i32, i32
  }
}

</mosaic_0001>

<bundles_post_ra>
// kernel: tpu_custom_call.1
= control target key start
LH: loop header
LB: loop body
LE: loop exit
PB: predicated region body
PF: predicated region fallthrough
CT: control target
= control target key end

     0   :  { %s1239_s0 = inlined_call_operand.vmem [shape: bf16[32,256], index: 0, kind: input, shape index: {}]   ;;  %s1240_s1 = inlined_call_operand.vmem [shape: bf16[128,32], index: 1, kind: input, shape index: {}]   ;;  %s1241_s2 = inlined_call_operand.vmem [shape: f32[128,1], index: 2, kind: input, shape index: {}]   ;;  %s1242_s3 = inlined_call_operand.vmem [shape: bf16[64,128], index: 3, kind: input, shape index: {}]   ;;  %s1243_s4 = inlined_call_operand.vmem [shape: f32[64,1], index: 4, kind: input, shape index: {}]   ;;  %s1244_s5 = inlined_call_operand.vmem [shape: bf16[32,64], index: 5, kind: input, shape index: {}]   ;;  %s1245_s6 = inlined_call_operand.vmem [shape: f32[32,1], index: 6, kind: input, shape index: {}]   ;;  %s1246_s7 = inlined_call_operand.vmem [shape: bf16[16,32], index: 7, kind: input, shape index: {}]   ;;  %s1247_s8 = inlined_call_operand.vmem [shape: f32[16,1], index: 8, kind: input, shape index: {}]   ;;  %s1248_s9 = inlined_call_operand.vmem [shape: bf16[1,16], index: 9, kind: input, shape index: {}]   ;;  %s1249_s10 = inlined_call_operand.<no memory space> [shape: f32[1,1], index: 10, kind: input, shape index: {}]   ;;  %s1250_s11 = inlined_call_operand.hbm [shape: f32[1,256], index: 11, kind: output, shape index: {}]  }
   0x1   :  { %v16_v0 = vstv %s1249_s10 }
   0x2   :  { %17 = vst [vmem:[#allocation2] sm:$0x1] %v16_v0 }
   0x3   :  { %v76_v1 = vld [vmem:[%s1241_s2 + $0x70] sm:$0xff]  ;;  %v880_v3 = vld [vmem:[%s1239_s0 + $0x14] sm:$0xf0]  ;;  %v935_v4 = vmov 0   ;;  %v821_v7 = vld [vmem:[%s1239_s0 + $0x18] sm:$0xf0] }
   0x4   :  { %v819_v2 = vld [vmem:[%s1239_s0 + $0x10] sm:$0xf]  ;;  %898 = vset.pattern.permute.xlu0 %v935_v4  ;;  %v879_v6 = vld [vmem:[%s1239_s0 + $0x14] sm:$0xf]  ;;  %v811_v8 = vld [vmem:[%s1239_s0] sm:$0xf]  ;;  %900 = vset.pattern.permute.xlu2 %v935_v4 }
   0x5   :  { %v820_v5 = vor.u32 %v880_v3, %v819_v2  ;;  %150 = vperm.xlu0 %898, %v76_v1   ;;  %v824_v9 = vor.u32 %v879_v6, %v821_v7  ;;  %v878_v10 = vld [vmem:[%s1239_s0 + $0x4] sm:$0xf0]  ;;  %v877_v11 = vld [vmem:[%s1239_s0 + $0x4] sm:$0xf]  ;;  %v813_v12 = vld [vmem:[%s1239_s0 + $0x8] sm:$0xf0]  ;;  %899 = vset.pattern.permute.xlu1 %v935_v4 }
   0x6   :  { %v812_v13 = vor.u32 %v878_v10, %v811_v8  ;;  %v74_v14 = vld [vmem:[%s1241_s2 + $0x60] sm:$0xff]  ;;  %v816_v15 = vor.u32 %v877_v11, %v813_v12  ;;  %v72_v16 = vld [vmem:[%s1241_s2 + $0x50] sm:$0xff]  ;;  %v77_v18 = vld [vmem:[%s1241_s2 + $0x78] sm:$0xff]  ;;  %vm218_vm0 = vcmask 261120  }
   0x7   :  { %249 = vmatpush.bf16.msra.mxu0 %v820_v5  ;;  %298 = vmatpush.bf16.msra.mxu1 %v824_v9  ;;  %v881_v17 = vld [vmem:[%s1240_s1] sm:$0xff] }
   0x8   :  { %140 = vperm.xlu1 %899, %v74_v14   ;;  %130 = vperm.xlu2 %900, %v72_v16  }
   0xb   :  { %250 = vmatpush.bf16.msra.mxu0 %v812_v13  ;;  %299 = vmatpush.bf16.msra.mxu1 %v816_v15 }
   0xc   :  { %18 = vsyncpa [#allocation4], 0  ;;  %v75_v19 = vld [vmem:[%s1241_s2 + $0x68] sm:$0xff]  ;;  %v73_v20 = vld [vmem:[%s1241_s2 + $0x58] sm:$0xff]  ;;  %vm589_vm1 = vcmask 523264   ;;  %vm710_vm2 = vcmask 130048  }
   0xd   :  { %155 = vperm.xlu0 %898, %v77_v18   ;;  %v70_v21 = vld [vmem:[%s1241_s2 + $0x40] sm:$0xff]  ;;  %v71_v22 = vld [vmem:[%s1241_s2 + $0x48] sm:$0xff]  ;;  %v68_v23 = vld [vmem:[%s1241_s2 + $0x30] sm:$0xff]  ;;  %vm753_vm3 = vcmask 1040384  }
   0xe   :  { %825 = vmatmul.msk.bf16.vlgmr.msra.gmra.mxu0 %vm218_vm0, %v881_v17  ;;  %833 = vmatmul.msk.bf16.vlgmr.msra.gmra.mxu1 %vm218_vm0, %v881_v17  ;;  %v882_v24 = vld [vmem:[%s1240_s1 + $0x8] sm:$0xff]  ;;  %v69_v25 = vld [vmem:[%s1241_s2 + $0x38] sm:$0xff]  ;;  %v66_v26 = vld [vmem:[%s1241_s2 + $0x20] sm:$0xff] }
   0xf   :  { %v67_v27 = vld [vmem:[%s1241_s2 + $0x28] sm:$0xff]  ;;  %v64_v28 = vld [vmem:[%s1241_s2 + $0x10] sm:$0xff]  ;;  %v65_v29 = vld [vmem:[%s1241_s2 + $0x18] sm:$0xff] }
  0x10   :  { %145 = vperm.xlu1 %899, %v75_v19   ;;  %135 = vperm.xlu2 %900, %v73_v20   ;;  %v62_v30 = vld [vmem:[%s1241_s2] sm:$0xff]  ;;  %v883_v31 = vld [vmem:[%s1240_s1 + $0x10] sm:$0xff]  ;;  %v63_v32 = vld [vmem:[%s1241_s2 + $0x8] sm:$0xff]  ;;  %s768_s2 = sshll.u32 %s1250_s11, 4  ;;  %s769_s2 = int_to_ptr.hbm [resolvable:$true] %s768_s2 }
  0x11   :  { %v884_v33 = vld [vmem:[%s1240_s1 + $0x18] sm:$0xff]  ;;  %v401_v34 = vld [vmem:[%s1243_s4 + $0x20] sm:$0xff]  ;;  %v403_v35 = vld [vmem:[%s1243_s4 + $0x30] sm:$0xff] }
  0x12   :  { %v400_v36 = vld [vmem:[%s1243_s4 + $0x18] sm:$0xff]  ;;  %v885_v37 = vld [vmem:[%s1240_s1 + $0x20] sm:$0xff]  ;;  %v402_v38 = vld [vmem:[%s1243_s4 + $0x28] sm:$0xff] }
  0x13   :  { %v557_v39 = vld [vmem:[%s1245_s6 + $0x10] sm:$0xff]  ;;  %v397_v40 = vld [vmem:[%s1243_s4] sm:$0xff]  ;;  %v556_v41 = vld [vmem:[%s1245_s6 + $0x8] sm:$0xff] }
  0x14   :  { %v886_v42 = vld [vmem:[%s1240_s1 + $0x28] sm:$0xff]  ;;  %v558_v43 = vld [vmem:[%s1245_s6 + $0x18] sm:$0xff]  ;;  %v703_v44 = vld [vmem:[#allocation2] sm:$0x1] }
  0x15   :  { %120 = vperm.xlu0 %898, %v70_v21   ;;  %v404_v45 = vld [vmem:[%s1243_s4 + $0x38] sm:$0xff]  ;;  %v648_v46 = vld [vmem:[%s1247_s8] sm:$0xff]  ;;  %v887_v47 = vld [vmem:[%s1240_s1 + $0x30] sm:$0xff] }
  0x16   :  { %v399_v48 = vld [vmem:[%s1243_s4 + $0x10] sm:$0xff]  ;;  %v398_v50 = vld [vmem:[%s1243_s4 + $0x8] sm:$0xff]  ;;  %v888_v52 = vld [vmem:[%s1240_s1 + $0x38] sm:$0xff] }
  0x17   :  { %v555_v54 = vld [vmem:[%s1245_s6] sm:$0xff]  ;;  %v649_v58 = vld [vmem:[%s1247_s8 + $0x8] sm:$0xff] }
  0x18   :  { %125 = vperm.xlu1 %899, %v71_v22   ;;  %110 = vperm.xlu2 %900, %v68_v23  }
  0x1d   :  { %115 = vperm.xlu0 %898, %v69_v25  }
  0x1e   :  { %826 = vmatmul.msk.bf16.gmra.mxu0 %vm218_vm0, %v882_v24  ;;  %834 = vmatmul.msk.bf16.gmra.mxu1 %vm218_vm0, %v882_v24 }
  0x20   :  { %100 = vperm.xlu1 %899, %v66_v26   ;;  %105 = vperm.xlu2 %900, %v67_v27  }
  0x25   :  { %90 = vperm.xlu0 %898, %v64_v28  }
  0x28   :  { %95 = vperm.xlu1 %899, %v65_v29   ;;  %80 = vperm.xlu2 %900, %v62_v30  }
  0x2d   :  { %85 = vperm.xlu0 %898, %v63_v32  }
  0x2e   :  { %827 = vmatmul.msk.bf16.gmra.mxu0 %vm218_vm0, %v883_v31  ;;  %835 = vmatmul.msk.bf16.gmra.mxu1 %vm218_vm0, %v883_v31 }
  0x30   :  { %437 = vperm.xlu1 %899, %v403_v35   ;;  %442 = vperm.xlu2 %900, %v404_v45  }
  0x35   :  { %427 = vperm.xlu0 %898, %v401_v34  }
  0x38   :  { %432 = vperm.xlu1 %899, %v402_v38   ;;  %417 = vperm.xlu2 %900, %v399_v48  }
  0x3d   :  { %422 = vperm.xlu0 %898, %v400_v36  }
  0x3e   :  { %828 = vmatmul.msk.bf16.gmra.mxu0 %vm218_vm0, %v884_v33  ;;  %836 = vmatmul.msk.bf16.gmra.mxu1 %vm218_vm0, %v884_v33 }
  0x40   :  { %407 = vperm.xlu1 %899, %v397_v40   ;;  %412 = vperm.xlu2 %900, %v398_v50  }
  0x45   :  { %571 = vperm.xlu0 %898, %v557_v39  }
  0x48   :  { %576 = vperm.xlu1 %899, %v558_v43   ;;  %561 = vperm.xlu2 %900, %v555_v54  }
  0x4d   :  { %566 = vperm.xlu0 %898, %v556_v41  }
  0x4e   :  { %829 = vmatmul.msk.bf16.gmra.mxu0 %vm218_vm0, %v885_v37  ;;  %837 = vmatmul.msk.bf16.gmra.mxu1 %vm218_vm0, %v885_v37 }
  0x50   :  { %652 = vperm.xlu1 %899, %v648_v46   ;;  %657 = vperm.xlu2 %900, %v649_v58  }
  0x55   :  { %706 = vperm.xlu0 %898, %v703_v44  }
  0x5e   :  { %830 = vmatmul.msk.bf16.gmra.mxu0 %vm218_vm0, %v886_v42  ;;  %838 = vmatmul.msk.bf16.gmra.mxu1 %vm218_vm0, %v886_v42 }
  0x62   :  { %v1140_v49 = vpop.permute.xlu2 %130 }
  0x6a   :  { %v1155_v55 = vpop.permute.xlu2 %135 }
  0x6e   :  { %831 = vmatmul.msk.bf16.gmra.mxu0 %vm218_vm0, %v887_v47  ;;  %839 = vmatmul.msk.bf16.gmra.mxu1 %vm218_vm0, %v887_v47 }
  0x72   :  { %v111_v59 = vpop.permute.xlu2 %110 }
  0x77   :  { %v1145_v51 = vpop.permute.xlu0 %150 }
  0x7a   :  { %v1150_v53 = vpop.permute.xlu1 %140  ;;  %v106_v1 = vpop.permute.xlu2 %105 }
  0x7e   :  { %832 = vmatmul.msk.bf16.gmra.mxu0 %vm218_vm0, %v888_v52  ;;  %840 = vmatmul.msk.bf16.gmra.mxu1 %vm218_vm0, %v888_v52 }
  0x7f   :  { %v1159_v56 = vpop.permute.xlu0 %155 }
  0x82   :  { %v1161_v57 = vpop.permute.xlu1 %145  ;;  %v81_v7 = vpop.permute.xlu2 %80 }
  0x87   :  { %v1166_v60 = vpop.permute.xlu0 %120 }
  0x8a   :  { %v1168_v63 = vpop.permute.xlu1 %125 }
  0x8b   :  { %v252_v61 = vpop.f32.mrf.mxu0  ;;  %v301_v62 = vpop.f32.mrf.mxu1 }
  0x8c   :  { %v253_v9 = vadd.f32 %v252_v61, %v81_v7  ;;  %v302_v10 = vadd.f32 %v301_v62, %v81_v7 }
  0x8e   :  { %v341_v15 = vmax.f32 %v253_v9, 0.0  ;;  %v342_v17 = vmax.f32 %v302_v10, 0.0 }
  0x8f   :  { %v116_v0 = vpop.permute.xlu0 %115 }
  0x92   :  { %v101_v4 = vpop.permute.xlu1 %100 }
  0x93   :  { %v254_v2 = vpop.f32.mrf.mxu0  ;;  %v303_v3 = vpop.f32.mrf.mxu1 }
  0x97   :  { %v91_v5 = vpop.permute.xlu0 %90 }
  0x9a   :  { %v96_v14 = vpop.permute.xlu1 %95 }
  0x9b   :  { %v257_v6 = vpop.f32.mrf.mxu0  ;;  %v306_v8 = vpop.f32.mrf.mxu1 }
  0x9c   :  { %v258_v16 = vadd.f32 %v257_v6, %v91_v5  ;;  %v307_v18 = vadd.f32 %v306_v8, %v91_v5 }
  0x9e   :  { %v345_v27 = vmax.f32 %v258_v16, 0.0  ;;  %v346_v29 = vmax.f32 %v307_v18, 0.0 }
  0x9f   :  { %v86_v11 = vpop.permute.xlu0 %85 }
  0xa0   :  { %v255_v12 = vadd.f32 %v254_v2, %v86_v11  ;;  %v304_v13 = vadd.f32 %v303_v3, %v86_v11 }
  0xa2   :  { %v343_v19 = vmax.f32 %v255_v12, 0.0  ;;  %v344_v20 = vmax.f32 %v304_v13, 0.0 }
  0xa3   :  { %v259_v21 = vpop.f32.mrf.mxu0  ;;  %v308_v23 = vpop.f32.mrf.mxu1 }
  0xa4   :  { %v260_v22 = vadd.f32 %v259_v21, %v96_v14  ;;  %v309_v24 = vadd.f32 %v308_v23, %v96_v14  ;;  %v1170_v25 = vpack.c.bf16 %v343_v19, %v341_v15  ;;  %v1172_v26 = vpack.c.bf16 %v344_v20, %v342_v17 }
  0xa6   :  { %v347_v28 = vmax.f32 %v260_v22, 0.0  ;;  %v348_v30 = vmax.f32 %v309_v24, 0.0 }
  0xa8   :  { %v1174_v31 = vpack.c.bf16 %v347_v28, %v345_v27  ;;  %v1176_v32 = vpack.c.bf16 %v348_v30, %v346_v29 }
  0xab   :  { %v262_v33 = vpop.f32.mrf.mxu0  ;;  %v311_v34 = vpop.f32.mrf.mxu1 }
  0xac   :  { %v263_v35 = vadd.f32 %v262_v33, %v101_v4  ;;  %v312_v36 = vadd.f32 %v311_v34, %v101_v4 }
  0xae   :  { %v349_v41 = vmax.f32 %v263_v35, 0.0  ;;  %v350_v43 = vmax.f32 %v312_v36, 0.0 }
  0xb3   :  { %v264_v37 = vpop.f32.mrf.mxu0  ;;  %v313_v39 = vpop.f32.mrf.mxu1 }
  0xb4   :  { %v265_v38 = vadd.f32 %v264_v37, %v106_v1  ;;  %v314_v40 = vadd.f32 %v313_v39, %v106_v1 }
  0xb6   :  { %v351_v42 = vmax.f32 %v265_v38, 0.0  ;;  %v352_v44 = vmax.f32 %v314_v40, 0.0 }
  0xb8   :  { %v1178_v45 = vpack.c.bf16 %v351_v42, %v349_v41  ;;  %v1180_v46 = vpack.c.bf16 %v352_v44, %v350_v43 }
  0xbb   :  { %v267_v47 = vpop.f32.mrf.mxu0  ;;  %v316_v48 = vpop.f32.mrf.mxu1 }
  0xbc   :  { %v268_v50 = vadd.f32 %v267_v47, %v111_v59  ;;  %v317_v52 = vadd.f32 %v316_v48, %v111_v59 }
  0xbe   :  { %v353_v2 = vmax.f32 %v268_v50, 0.0  ;;  %v354_v4 = vmax.f32 %v317_v52, 0.0 }
  0xc3   :  { %v269_v54 = vpop.f32.mrf.mxu0  ;;  %v318_v61 = vpop.f32.mrf.mxu1 }
  0xc4   :  { %v270_v58 = vadd.f32 %v269_v54, %v116_v0  ;;  %v319_v62 = vadd.f32 %v318_v61, %v116_v0 }
  0xc6   :  { %v355_v3 = vmax.f32 %v270_v58, 0.0  ;;  %v356_v1 = vmax.f32 %v319_v62, 0.0 }
  0xc8   :  { %v1182_v5 = vpack.c.bf16 %v355_v3, %v353_v2  ;;  %v1184_v6 = vpack.c.bf16 %v356_v1, %v354_v4 }
  0xcb   :  { %v272_v7 = vpop.f32.mrf.mxu0  ;;  %v321_v8 = vpop.f32.mrf.mxu1 }
  0xcc   :  { %v322_v58 = vadd.f32 %v321_v8, %v1166_v60 }
  0xce   :  { %v358_v1 = vmax.f32 %v322_v58, 0.0 }
  0xd3   :  { %v274_v9 = vpop.f32.mrf.mxu0  ;;  %v323_v10 = vpop.f32.mrf.mxu1 }
  0xd4   :  { %v324_v48 = vadd.f32 %v323_v10, %v1168_v63 }
  0xd6   :  { %v360_v2 = vmax.f32 %v324_v48, 0.0 }
  0xdb   :  { %v277_v11 = vpop.f32.mrf.mxu0  ;;  %v326_v12 = vpop.f32.mrf.mxu1 }
  0xe3   :  { %v279_v13 = vpop.f32.mrf.mxu0  ;;  %v328_v59 = vpop.f32.mrf.mxu1 }
  0xe4   :  { %v329_v39 = vadd.f32 %v328_v59, %v1155_v55 }
  0xe6   :  { %v364_v50 = vmax.f32 %v329_v39, 0.0 }
  0xeb   :  { %v282_v14 = vpop.f32.mrf.mxu0  ;;  %v331_v15 = vpop.f32.mrf.mxu1 }
  0xec   :  { %v283_v29 = vadd.f32 %v282_v14, %v1150_v53  ;;  %v332_v34 = vadd.f32 %v331_v15, %v1150_v53  ;;  %v275_v53 = vadd.f32 %v274_v9, %v1168_v63  ;;  %v382_v63 = vpack.c.bf16 %v360_v2, %v358_v1  ;;  %v443_v14 = vpop.permute.xlu2 %442  ;;  %v438_v15 = vpop.permute.xlu1 %437 }
  0xee   :  { %v365_v42 = vmax.f32 %v283_v29, 0.0  ;;  %v366_v43 = vmax.f32 %v332_v34, 0.0  ;;  %v359_v62 = vmax.f32 %v275_v53, 0.0 }
  0xf3   :  { %v284_v16 = vpop.f32.mrf.mxu0  ;;  %v333_v0 = vpop.f32.mrf.mxu1 }
  0xf4   :  { %v285_v22 = vadd.f32 %v284_v16, %v1161_v57  ;;  %v334_v27 = vadd.f32 %v333_v0, %v1161_v57  ;;  %v278_v57 = vadd.f32 %v277_v11, %v1140_v49 }
  0xf6   :  { %v367_v37 = vmax.f32 %v285_v22, 0.0  ;;  %v368_v40 = vmax.f32 %v334_v27, 0.0  ;;  %v361_v54 = vmax.f32 %v278_v57, 0.0 }
  0xf8   :  { %v385_v47 = vpack.c.bf16 %v367_v37, %v365_v42  ;;  %v386_v52 = vpack.c.bf16 %v368_v40, %v366_v43 }
  0xfb   :  { %v287_v17 = vpop.f32.mrf.mxu0  ;;  %v336_v18 = vpop.f32.mrf.mxu1 }
  0xfc   :  { %v288_v19 = vadd.f32 %v287_v17, %v1145_v51  ;;  %v337_v20 = vadd.f32 %v336_v18, %v1145_v51  ;;  %v280_v51 = vadd.f32 %v279_v13, %v1155_v55  ;;  %v273_v55 = vadd.f32 %v272_v7, %v1166_v60  ;;  %v889_v60 = vld [vmem:[%s1242_s3] sm:$0xff]  ;;  %v428_v17 = vpop.permute.xlu0 %427  ;;  %v418_v18 = vpop.permute.xlu2 %417 }
  0xfe   :  { %v369_v30 = vmax.f32 %v288_v19, 0.0  ;;  %v370_v35 = vmax.f32 %v337_v20, 0.0  ;;  %v363_v44 = vmax.f32 %v280_v51, 0.0  ;;  %v357_v4 = vmax.f32 %v273_v55, 0.0  ;;  %v433_v20 = vpop.permute.xlu1 %432 }
 0x100   :  { %v381_v9 = vpack.c.bf16 %v359_v62, %v357_v4 }
 0x103   :  { %v289_v21 = vpop.f32.mrf.mxu0  ;;  %v338_v24 = vpop.f32.mrf.mxu1 }
 0x104   :  { %v290_v23 = vadd.f32 %v289_v21, %v1159_v56  ;;  %v339_v28 = vadd.f32 %v338_v24, %v1159_v56  ;;  %v327_v56 = vadd.f32 %v326_v12, %v1140_v49  ;;  %v383_v49 = vpack.c.bf16 %v363_v44, %v361_v54  ;;  %v413_v53 = vpop.permute.xlu2 %412 }
 0x106   :  { %v371_v33 = vmax.f32 %v290_v23, 0.0  ;;  %v372_v36 = vmax.f32 %v339_v28, 0.0  ;;  %v362_v61 = vmax.f32 %v327_v56, 0.0  ;;  %v408_v55 = vpop.permute.xlu1 %407 }
 0x108   :  { %v387_v38 = vpack.c.bf16 %v371_v33, %v369_v30  ;;  %v388_v41 = vpack.c.bf16 %v372_v36, %v370_v35  ;;  %v384_v3 = vpack.c.bf16 %v364_v50, %v362_v61  ;;  %v423_v35 = vpop.permute.xlu0 %422 }
 0x10a   :  { %469 = vmatpush.bf16.msra.mxu2 %v387_v38  ;;  %498 = vmatpush.bf16.msra.mxu3 %v388_v41 }
 0x10e   :  { %470 = vmatpush.bf16.msra.mxu2 %v385_v47  ;;  %499 = vmatpush.bf16.msra.mxu3 %v386_v52 }
 0x112   :  { %471 = vmatpush.bf16.msra.mxu2 %v383_v49  ;;  %500 = vmatpush.bf16.msra.mxu3 %v384_v3 }
 0x116   :  { %472 = vmatpush.bf16.msra.mxu2 %v381_v9  ;;  %501 = vmatpush.bf16.msra.mxu3 %v382_v63 }
 0x11a   :  { %473 = vmatpush.bf16.msra.mxu2 %v1182_v5  ;;  %502 = vmatpush.bf16.msra.mxu3 %v1184_v6 }
 0x11e   :  { %474 = vmatpush.bf16.msra.mxu2 %v1178_v45  ;;  %503 = vmatpush.bf16.msra.mxu3 %v1180_v46  ;;  %v890_v45 = vld [vmem:[%s1242_s3 + $0x8] sm:$0xff] }
 0x122   :  { %475 = vmatpush.bf16.msra.mxu2 %v1174_v31  ;;  %504 = vmatpush.bf16.msra.mxu3 %v1176_v32  ;;  %v891_v31 = vld [vmem:[%s1242_s3 + $0x10] sm:$0xff] }
 0x126   :  { %476 = vmatpush.bf16.msra.mxu2 %v1170_v25  ;;  %505 = vmatpush.bf16.msra.mxu3 %v1172_v26  ;;  %v892_v25 = vld [vmem:[%s1242_s3 + $0x18] sm:$0xff] }
 0x129   :  { %477 = vmatmul.bf16.vlgmr.msra.gmra.mxu2 %v889_v60  ;;  %506 = vmatmul.bf16.vlgmr.msra.gmra.mxu3 %v889_v60 }
 0x139   :  { %482 = vmatmul.bf16.gmra.mxu2 %v890_v45  ;;  %511 = vmatmul.bf16.gmra.mxu3 %v890_v45 }
 0x149   :  { %487 = vmatmul.bf16.gmra.mxu2 %v891_v31  ;;  %516 = vmatmul.bf16.gmra.mxu3 %v891_v31 }
 0x159   :  { %492 = vmatmul.bf16.gmra.mxu2 %v892_v25  ;;  %521 = vmatmul.bf16.gmra.mxu3 %v892_v25 }
 0x1ac   :  { %v478_v26 = vpop.f32.mrf.mxu2  ;;  %v507_v32 = vpop.f32.mrf.mxu3 }
 0x1ad   :  { %v479_v62 = vadd.f32 %v478_v26, %v408_v55  ;;  %v508_v2 = vadd.f32 %v507_v32, %v408_v55  ;;  %v894_v26 = vld [vmem:[%s1244_s5 + $0x8] sm:$0xff] }
 0x1af   :  { %v527_v60 = vmax.f32 %v479_v62, 0.0  ;;  %v528_v45 = vmax.f32 %v508_v2, 0.0 }
 0x1b4   :  { %v480_v46 = vpop.f32.mrf.mxu2  ;;  %v509_v5 = vpop.f32.mrf.mxu3 }
 0x1b5   :  { %v481_v48 = vadd.f32 %v480_v46, %v413_v53  ;;  %v510_v54 = vadd.f32 %v509_v5, %v413_v53  ;;  %v893_v46 = vld [vmem:[%s1244_s5] sm:$0xff] }
 0x1b7   :  { %v529_v4 = vmax.f32 %v481_v48, 0.0  ;;  %v530_v9 = vmax.f32 %v510_v54, 0.0 }
 0x1b9   :  { %v543_v31 = vpack.c.bf16 %v529_v4, %v527_v60  ;;  %v544_v25 = vpack.c.bf16 %v530_v9, %v528_v45 }
 0x1bc   :  { %v483_v6 = vpop.f32.mrf.mxu2  ;;  %v512_v7 = vpop.f32.mrf.mxu3 }
 0x1bd   :  { %v484_v56 = vadd.f32 %v483_v6, %v418_v18  ;;  %v513_v44 = vadd.f32 %v512_v7, %v418_v18  ;;  %v562_v18 = vpop.permute.xlu2 %561 }
 0x1bf   :  { %v531_v49 = vmax.f32 %v484_v56, 0.0  ;;  %v532_v3 = vmax.f32 %v513_v44, 0.0 }
 0x1c4   :  { %v485_v8 = vpop.f32.mrf.mxu2  ;;  %v514_v10 = vpop.f32.mrf.mxu3 }
 0x1c5   :  { %v486_v38 = vadd.f32 %v485_v8, %v423_v35  ;;  %v515_v41 = vadd.f32 %v514_v10, %v423_v35  ;;  %v572_v8 = vpop.permute.xlu0 %571 }
 0x1c7   :  { %v533_v50 = vmax.f32 %v486_v38, 0.0  ;;  %v534_v58 = vmax.f32 %v515_v41, 0.0  ;;  %v895_v38 = vld [vmem:[%s1246_s7] sm:$0xff] }
 0x1c9   :  { %v545_v1 = vpack.c.bf16 %v533_v50, %v531_v49  ;;  %v546_v63 = vpack.c.bf16 %v534_v58, %v532_v3 }
 0x1cc   :  { %v488_v11 = vpop.f32.mrf.mxu2  ;;  %v517_v12 = vpop.f32.mrf.mxu3 }
 0x1cd   :  { %v489_v30 = vadd.f32 %v488_v11, %v428_v17  ;;  %v518_v36 = vadd.f32 %v517_v12, %v428_v17  ;;  %v567_v12 = vpop.permute.xlu0 %566 }
 0x1cf   :  { %v535_v43 = vmax.f32 %v489_v30, 0.0  ;;  %v536_v47 = vmax.f32 %v518_v36, 0.0 }
 0x1d4   :  { %v490_v13 = vpop.f32.mrf.mxu2  ;;  %v519_v59 = vpop.f32.mrf.mxu3 }
 0x1d5   :  { %v491_v23 = vadd.f32 %v490_v13, %v433_v20  ;;  %v520_v28 = vadd.f32 %v519_v59, %v433_v20  ;;  %v577_v59 = vpop.permute.xlu1 %576  ;;  %v707_v62 = vpop.permute.xlu0 %706 }
 0x1d6   :  { %v709_v49 = vperm.slane %v707_v62, 0 }
 0x1d7   :  { %v537_v39 = vmax.f32 %v491_v23, 0.0  ;;  %v538_v57 = vmax.f32 %v520_v28, 0.0 }
 0x1d9   :  { %v547_v52 = vpack.c.bf16 %v537_v39, %v535_v43  ;;  %v548_v61 = vpack.c.bf16 %v538_v57, %v536_v47 }
 0x1dc   :  { %v493_v16 = vpop.f32.mrf.mxu2  ;;  %v522_v0 = vpop.f32.mrf.mxu3 }
 0x1dd   :  { %v494_v19 = vadd.f32 %v493_v16, %v438_v15  ;;  %v523_v21 = vadd.f32 %v522_v0, %v438_v15  ;;  %v653_v41 = vpop.permute.xlu1 %652 }
 0x1df   :  { %v539_v33 = vmax.f32 %v494_v19, 0.0  ;;  %v540_v51 = vmax.f32 %v523_v21, 0.0 }
 0x1e4   :  { %v495_v22 = vpop.f32.mrf.mxu2  ;;  %v524_v27 = vpop.f32.mrf.mxu3 }
 0x1e5   :  { %v496_v24 = vadd.f32 %v495_v22, %v443_v14  ;;  %v525_v29 = vadd.f32 %v524_v27, %v443_v14 }
 0x1e7   :  { %v541_v34 = vmax.f32 %v496_v24, 0.0  ;;  %v542_v37 = vmax.f32 %v525_v29, 0.0 }
 0x1e9   :  { %v549_v40 = vpack.c.bf16 %v541_v34, %v539_v33  ;;  %v550_v42 = vpack.c.bf16 %v542_v37, %v540_v51 }
 0x1eb   :  { %600 = vmatpush.bf16.msrb.mxu2 %v549_v40  ;;  %619 = vmatpush.bf16.msrb.mxu3 %v550_v42  ;;  %v658_v42 = vpop.permute.xlu2 %657 }
 0x1ef   :  { %601 = vmatpush.bf16.msrb.mxu2 %v547_v52  ;;  %620 = vmatpush.bf16.msrb.mxu3 %v548_v61  ;;  %v702_v61 = vld [vmem:[%s1248_s9] sm:$0x1]  ;;  %s936_s9 = smov [#allocation3]  }
 0x1f0   :  { %s766_s14 = sshll.u32 %s936_s9, 4  ;;  %s767_s14 = int_to_ptr.vmem [resolvable:$true] %s766_s14 }
 0x1f3   :  { %602 = vmatpush.bf16.msrb.mxu2 %v545_v1  ;;  %621 = vmatpush.bf16.msrb.mxu3 %v546_v63 }
 0x1f7   :  { %603 = vmatpush.bf16.msrb.mxu2 %v543_v31  ;;  %622 = vmatpush.bf16.msrb.mxu3 %v544_v25 }
 0x1fa   :  { %865 = vmatmul.msk.bf16.vlgmr.msrb.gmra.mxu2 %vm589_vm1, %v893_v46  ;;  %867 = vmatmul.msk.bf16.vlgmr.msrb.gmra.mxu3 %vm589_vm1, %v893_v46 }
 0x20a   :  { %866 = vmatmul.msk.bf16.gmra.mxu2 %vm589_vm1, %v894_v26  ;;  %868 = vmatmul.msk.bf16.gmra.mxu3 %vm589_vm1, %v894_v26 }
 0x27d   :  { %v605_v32 = vpop.f32.mrf.mxu2  ;;  %v624_v5 = vpop.f32.mrf.mxu3 }
 0x27e   :  { %v606_v21 = vadd.f32 %v605_v32, %v562_v18  ;;  %v625_v24 = vadd.f32 %v624_v5, %v562_v18 }
 0x280   :  { %v634_v35 = vmax.f32 %v606_v21, 0.0  ;;  %v635_v36 = vmax.f32 %v625_v24, 0.0 }
 0x285   :  { %v607_v6 = vpop.f32.mrf.mxu2  ;;  %v626_v7 = vpop.f32.mrf.mxu3 }
 0x286   :  { %v608_v16 = vadd.f32 %v607_v6, %v567_v12  ;;  %v627_v19 = vadd.f32 %v626_v7, %v567_v12  ;;  %v756_v6 = vlaneseq }
 0x288   :  { %v636_v29 = vmax.f32 %v608_v16, 0.0  ;;  %v637_v33 = vmax.f32 %v627_v19, 0.0  ;;  %vm758_vm4 = vcmp.lt.s32.totalorder %v756_v6, 256 }
 0x28a   :  { %v642_v51 = vpack.c.bf16 %v636_v29, %v634_v35  ;;  %v643_v37 = vpack.c.bf16 %v637_v33, %v635_v36 }
 0x28d   :  { %v610_v10 = vpop.f32.mrf.mxu2  ;;  %v629_v11 = vpop.f32.mrf.mxu3 }
 0x28e   :  { %v611_v13 = vadd.f32 %v610_v10, %v572_v8  ;;  %v630_v14 = vadd.f32 %v629_v11, %v572_v8 }
 0x290   :  { %v638_v22 = vmax.f32 %v611_v13, 0.0  ;;  %v639_v27 = vmax.f32 %v630_v14, 0.0 }
 0x295   :  { %v612_v15 = vpop.f32.mrf.mxu2  ;;  %v631_v17 = vpop.f32.mrf.mxu3 }
 0x296   :  { %v613_v0 = vadd.f32 %v612_v15, %v577_v59  ;;  %v632_v20 = vadd.f32 %v631_v17, %v577_v59 }
 0x298   :  { %v640_v23 = vmax.f32 %v613_v0, 0.0  ;;  %v641_v28 = vmax.f32 %v632_v20, 0.0 }
 0x29a   :  { %v644_v30 = vpack.c.bf16 %v640_v23, %v638_v22  ;;  %v645_v34 = vpack.c.bf16 %v641_v28, %v639_v27 }
 0x29c   :  { %674 = vmatpush.bf16.msra.mxu2 %v644_v30  ;;  %688 = vmatpush.bf16.msra.mxu3 %v645_v34 }
 0x2a0   :  { %675 = vmatpush.bf16.msra.mxu2 %v642_v51  ;;  %689 = vmatpush.bf16.msra.mxu3 %v643_v37 }
 0x2a3   :  { %873 = vmatmul.msk.bf16.vlgmr.msra.gmra.mxu2 %vm218_vm0, %v895_v38  ;;  %874 = vmatmul.msk.bf16.vlgmr.msra.gmra.mxu3 %vm218_vm0, %v895_v38 }
 0x326   :  { %v677_v39 = vpop.f32.mrf.mxu2  ;;  %v691_v40 = vpop.f32.mrf.mxu3 }
 0x327   :  { %v678_v57 = vadd.f32 %v677_v39, %v653_v41  ;;  %v692_v56 = vadd.f32 %v691_v40, %v653_v41 }
 0x329   :  { %v696_v48 = vmax.f32 %v678_v57, 0.0  ;;  %v697_v52 = vmax.f32 %v692_v56, 0.0 }
 0x32e   :  { %v679_v43 = vpop.f32.mrf.mxu2  ;;  %v693_v44 = vpop.f32.mrf.mxu3 }
 0x32f   :  { %v680_v53 = vadd.f32 %v679_v43, %v658_v42  ;;  %v694_v47 = vadd.f32 %v693_v44, %v658_v42 }
 0x331   :  { %v698_v50 = vmax.f32 %v680_v53, 0.0  ;;  %v699_v55 = vmax.f32 %v694_v47, 0.0 }
 0x333   :  { %v700_v54 = vpack.c.bf16 %v698_v50, %v696_v48  ;;  %v701_v58 = vpack.c.bf16 %v699_v55, %v697_v52 }
 0x335   :  { %721 = vmatpush.bf16.msrb.mxu0 %v700_v54  ;;  %734 = vmatpush.bf16.msrb.mxu1 %v701_v58 }
 0x338   :  { %875 = vmatmul.msk.bf16.vlgmr.msrb.gmra.mxu0 %vm710_vm2, %v702_v61  ;;  %876 = vmatmul.msk.bf16.vlgmr.msrb.gmra.mxu1 %vm710_vm2, %v702_v61 }
 0x3b5   :  { %v723_v2 = vpop.f32.mrf.mxu0  ;;  %v736_v4 = vpop.f32.mrf.mxu1 }
 0x3b6   :  { %v724_v3 = vadd.f32 %v723_v2, %v709_v49  ;;  %v737_v1 = vadd.f32 %v736_v4, %v709_v49 }
 0x3b8   :  { %v740_v9 = vsub.f32 0.0, %v724_v3  ;;  %v741_v63 = vsub.f32 0.0, %v737_v1 }
 0x3ba   :  { %v742_v60 = vmul.f32 1.442695, %v740_v9  ;;  %v744_v45 = vmul.f32 1.442695, %v741_v63 }
 0x3bc   :  { %901 = vpow2.f32 %v742_v60 }
 0x3bd   :  { %903 = vpow2.f32 %v744_v45  ;;  %v725_v31 = vpop.f32.mrf.mxu0  ;;  %v738_v25 = vpop.f32.mrf.mxu1 }
 0x3c2   :  { %v902_v46 = vpop.eup %901 }
 0x3c3   :  { %v904_v26 = vpop.eup %903  ;;  %v746_v32 = vadd.f32 1.0, %v902_v46 }
 0x3c4   :  { %v747_v5 = vadd.f32 1.0, %v904_v26 }
 0x3c6   :  { %905 = vrcp.f32 %v747_v5 }
 0x3c7   :  { %907 = vrcp.f32 %v746_v32 }
 0x3cc   :  { %v906_v7 = vpop.eup %905 }
 0x3cd   :  { %v752_v8 = vrot.slane %v906_v7, 7  ;;  %v908_v10 = vpop.eup %907 }
 0x3cf   :  { %v754_v11 = vsel %vm753_vm3, %v908_v10, %v752_v8 }
 0x3d0   :  { %760 = vst.msk [vmem:[#allocation3] sm:$0x3] %vm758_vm4, %v754_v11 }
 0x3d1   :  { %771 = dma.vmem_to_hbm [thread:$0]  %s767_s14, 32, %s769_s2, [#allocation4]  }
 0x3d2   :  { %933 = dma.done.wait [#allocation4], 32  }
 0x3d3   :  { %934 = vsyncadd [#allocation4], 4294967264 }
 0x3d4   :  { %776 = vsyncpa [#allocation4], 1 }

</bundles_post_ra>
